<compile_context>
chip_gen: v7x
topology: tpu7x:2x2x1
jax: 0.10.0
libtpu: 0.0.40
codegen_flags: <defaults>
</compile_context>

<pallas_src>
import functools

import jax
import jax.numpy as jnp
from jax.experimental import pallas as pl
from jax.experimental.pallas import tpu as pltpu


def _swish_kernel(beta_ref, x_ref, o_ref, *, compute_dtype):
    # beta is a (1, 1) f32 scalar tile in SMEM.
    beta = beta_ref[0, 0].astype(compute_dtype)
    x = x_ref[...].astype(compute_dtype)
    y = x * jax.nn.sigmoid(x * beta)
    o_ref[...] = y.astype(o_ref.dtype)


def swish_pallas(
    x: jax.Array,
    beta,
    *,
    block_bytes: int = 8 << 20,
    compute_dtype=None,
    donate_x: bool = False,
) -> jax.Array:
    """Elementwise swish with learned beta.

    x: any shape/dtype; beta: scalar (cast to f32, like the nn.Parameter).
    compute_dtype=None -> f32 compute (PyTorch-matching); pass jnp.bfloat16 on
    v6e/v7x for bf16 inputs if the extra precision is not needed.
    donate_x=True aliases x's buffer to the output (use when x is dead after).
    """
    orig_shape = x.shape
    dtype = x.dtype
    itemsize = jnp.dtype(dtype).itemsize
    # Sublane granularity per dtype: f32 -> 8, bf16 -> 16, int8/fp8 -> 32.
    sub = max(8, 32 // itemsize)

    n = x.size
    flat = x.reshape(-1)
    beta_arr = jnp.asarray(beta, dtype=jnp.float32).reshape(1, 1)

    cdt = jnp.float32 if compute_dtype is None else compute_dtype
    kernel = functools.partial(_swish_kernel, compute_dtype=cdt)

    # Widest lane dimension (last dim) that divides n -> large unmasked vst bursts.
    width = None
    for w in (1024, 512, 256, 128):
        if n % w == 0:
            width = w
            break

    if width is not None:
        # ---- aligned path: lane-dense 2D slab ----
        rows = n // width
        operand = flat.reshape(rows, width)
        out_shape = jax.ShapeDtypeStruct((rows, width), dtype)

        target_br = max(sub, (block_bytes // itemsize // width) // sub * sub)
        if n * itemsize <= (256 << 10) or rows < 2 * sub:
            # Tiny tensor: one full-array block (always a legal block shape);
            # grid-step overhead dominates here anyway.
            br = rows
        else:
            # Never emit a single huge block: force >=2 (>=4 when possible)
            # row blocks so DMA/compute overlap and both v7x cores get work,
            # but never exceed the ~block_bytes target block size.
            min_splits = 4 if rows >= 4 * sub else 2
            br_cap = max(sub, (rows // min_splits) // sub * sub)
            br = min(target_br, br_cap)
        grid = (pl.cdiv(rows, br),)
        block_shape = (br, width)
        index_map = lambda i: (i, 0)
        actual_block_bytes = br * width * itemsize
    else:
        # ---- ragged path: 1D with masked partial last block (no pad / no slice,
        # so no extra HBM round trip) ----
        unit = sub * 128
        blk_target = max(unit, (block_bytes // itemsize) // unit * unit)
        if n <= blk_target:
            blk = n            # single block equal to the full array dim: legal
            grid = (1,)
        else:
            blk = blk_target   # multiple of sub*128; Pallas masks the last block
            grid = (pl.cdiv(n, blk),)
        operand = flat
        out_shape = jax.ShapeDtypeStruct((n,), dtype)
        block_shape = (blk,)
        index_map = lambda i: (i,)
        actual_block_bytes = blk * itemsize

    # 2 input bufs + 2 output bufs per block, plus slack for internal scratch.
    # Defaults give <= 40 MiB: fits v7x's 64 MiB physical VMEM per TC and raises
    # v5e's 16 MiB scoped default.
    vmem_limit = 4 * actual_block_bytes + (8 << 20)

    out = pl.pallas_call(
        kernel,
        out_shape=out_shape,
        grid_spec=pltpu.PrefetchScalarGridSpec(
            num_scalar_prefetch=0,
            grid=grid,
            in_specs=[
                pl.BlockSpec(memory_space=pltpu.MemorySpace.SMEM),  # beta (1,1)
                pl.BlockSpec(block_shape, index_map),               # x tile
            ],
            out_specs=pl.BlockSpec(block_shape, index_map),
        ),
        compiler_params=pltpu.CompilerParams(
            dimension_semantics=("parallel",),
            vmem_limit_bytes=vmem_limit,
        ),
        input_output_aliases=({1: 0} if donate_x else {}),
    )(beta_arr, operand)

    return out.reshape(orig_shape)


if __name__ == "__main__":
    key = jax.random.PRNGKey(0)

    # Deterministic parameter init, matching Swish(beta=1.0).
    beta = jnp.float32(1.0)

    def ref(x):
        return x * jax.nn.sigmoid(x * beta)

    k0, k1, k2, k3 = jax.random.split(key, 4)

    # Primary NCHW activation tensor (small: single-block path).
    x = jax.random.normal(k0, (2, 4, 16, 16), dtype=jnp.float32)
    y = jax.block_until_ready(swish_pallas(x, beta))
    assert y.shape == x.shape and y.dtype == x.dtype
    assert jnp.max(jnp.abs(y - ref(x))) < 1e-6

    # Larger tensor: forced multi-block grid (>= 4 blocks), plus aliased-output variant.
    x_big = jax.random.normal(k1, (4, 16, 128, 128), dtype=jnp.float32)
    y_big = jax.block_until_ready(swish_pallas(x_big, beta))
    assert jnp.max(jnp.abs(y_big - ref(x_big))) < 1e-6
    y_alias = jax.block_until_ready(swish_pallas(x_big, beta, donate_x=True))
    assert jnp.max(jnp.abs(y_alias - ref(x_big))) < 1e-6

    # 2D path with a masked partial last row-block (rows % br != 0).
    x_part = jax.random.normal(k2, (2, 4, 72, 128), dtype=jnp.float32)
    y_part = jax.block_until_ready(swish_pallas(x_part, beta))
    assert jnp.max(jnp.abs(y_part - ref(x_part))) < 1e-6

    # Ragged (non-128-aligned): 1D single full-array block, no pad/slice copies.
    x_rag = jax.random.normal(k3, (3, 5, 17, 13), dtype=jnp.float32)
    y_rag = jax.block_until_ready(swish_pallas(x_rag, beta))
    assert y_rag.shape == x_rag.shape
    assert jnp.max(jnp.abs(y_rag - ref(x_rag))) < 1e-6

    # Ragged multi-block 1D path with a masked partial last block.
    x_rag2 = jax.random.normal(k0, (7, 37, 67), dtype=jnp.float32)
    y_rag2 = jax.block_until_ready(swish_pallas(x_rag2, beta, block_bytes=64 << 10))
    assert jnp.max(jnp.abs(y_rag2 - ref(x_rag2))) < 1e-6

    print("KERNEL_OK")
</pallas_src>

<mosaic_0001>
module attributes {stable_mosaic.version = 11 : i64} {
  func.func @_swish_kernel(%arg0: i32, %arg1: memref<1x1xf32, #tpu.memory_space<smem>>, %arg2: memref<2x1024xf32, #tpu.memory_space<vmem>>, %arg3: memref<2x1024xf32, #tpu.memory_space<vmem>>) attributes {dimension_semantics = [#tpu.dimension_semantics<parallel>], iteration_bounds = array<i64: 1>, scalar_prefetch = 0 : i64, scratch_operands = 0 : i64, tpu.core_type = #tpu.core_type<tc>, window_params = [{transform_indices = @transform_0, window_bounds = array<i64: 1, 1>}, {transform_indices = @transform_1, window_bounds = array<i64: 2, 1024>}, {transform_indices = @transform_2, window_bounds = array<i64: 2, 1024>}]} {
    %c0 = arith.constant 0 : index
    %c0_0 = arith.constant 0 : index
    %0 = memref.load %arg1[%c0, %c0_0] : memref<1x1xf32, #tpu.memory_space<smem>>
    %c0_1 = arith.constant 0 : index
    %c0_2 = arith.constant 0 : index
    %1 = vector.load %arg2[%c0_1, %c0_2] : memref<2x1024xf32, #tpu.memory_space<vmem>>, vector<2x1024xf32>
    %2 = vector.broadcast %0 : f32 to vector<2x1024xf32>
    %3 = arith.mulf %1, %2 : vector<2x1024xf32>
    %4 = arith.negf %3 : vector<2x1024xf32>
    %5 = math.exp %4 : vector<2x1024xf32>
    %cst = arith.constant 1.000000e+00 : f32
    %6 = vector.broadcast %cst : f32 to vector<2x1024xf32>
    %7 = arith.addf %6, %5 : vector<2x1024xf32>
    %8 = arith.divf %6, %7 : vector<2x1024xf32>
    %9 = arith.mulf %1, %8 : vector<2x1024xf32>
    %c0_3 = arith.constant 0 : index
    %c0_4 = arith.constant 0 : index
    %10 = vector.load %arg3[%c0_3, %c0_4] : memref<2x1024xf32, #tpu.memory_space<vmem>>, vector<2x1024xf32>
    tpu.vector_store %arg3[%c0_3, %c0_4], %9 {strides = array<i32>} : memref<2x1024xf32, #tpu.memory_space<vmem>>, vector<2x1024xf32>,
    return
  }
  func.func @transform_0(%arg0: i32) -> (i32, i32) {
    %c0_i32 = arith.constant 0 : i32
    %c0_i32_0 = arith.constant 0 : i32
    %c0_i32_1 = arith.constant 0 : i32
    return %c0_i32, %c0_i32_0 : i32, i32
  }
  func.func @transform_1(%arg0: i32) -> (i32, i32) {
    %c0_i32 = arith.constant 0 : i32
    %c0_i32_0 = arith.constant 0 : i32
    return %arg0, %c0_i32 : i32, i32
  }
  func.func @transform_2(%arg0: i32) -> (i32, i32) {
    %c0_i32 = arith.constant 0 : i32
    %c0_i32_0 = arith.constant 0 : i32
    return %arg0, %c0_i32 : i32, i32
  }
}

</mosaic_0001>

<bundles_post_ra>
// kernel: tpu_custom_call.1
= control target key start
LH: loop header
LB: loop body
LE: loop exit
PB: predicated region body
PF: predicated region fallthrough
CT: control target
= control target key end

     0   :  { %8 = vsyncpa [#allocation4], 0  ;;  %s166_s0 = inlined_call_operand.<no memory space> [shape: f32[1,1], index: 0, kind: input, shape index: {}]   ;;  %s167_s1 = inlined_call_operand.hbm [shape: f32[2,1024], index: 1, kind: input, shape index: {}]   ;;  %s168_s2 = inlined_call_operand.hbm [shape: f32[2,1024], index: 2, kind: output, shape index: {}]  }
   0x1   :  { %9 = vsyncpa [#allocation5], 0  ;;  %s122_s9 = smov [#allocation3]   ;;  %s74_s13 = scalar_lea.hbm %s167_s1, 256 }
   0x2   :  { %s18_s10 = sshll.u32 %s122_s9, 4  ;;  %p75_p0 = scmp.ne.s32.totalorder %s167_s1, %s74_s13  ;;  %s19_s10 = int_to_ptr.vmem [resolvable:$true] %s18_s10 }
   0x3   :  { %p78_p1 = scmp.lt.u32.totalorder %s74_s13, %s167_s1 }
   0x5   :  { %p80_p2 = pnand %p78_p1, %p75_p0 }
   0x7   :  { %83 = shalt.err (!%p80_p2)
}
   0x8   :  { %s84_s18 = scalar_lea.vmem %s19_s10, 256  ;;  %p89_p4 = scmp.lt.s32.totalorder %s19_s10, %s19_s10 }
   0x9   :  { %p85_p3 = scmp.ne.s32.totalorder %s19_s10, %s84_s18  ;;  %p90_p5 = scmp.lt.s32.totalorder %s84_s18, %s84_s18 }
   0xb   :  { %p91_p6 = por %p90_p5, %p89_p4 }
   0xd   :  { %p92_p7 = pnand %p91_p6, %p85_p3 }
   0xf   :  { %95 = shalt.err (!%p92_p7)
}
  0x10   :  { %21 = dma.hbm_to_vmem [thread:$0]  %s167_s1, 256, %s19_s10, [#allocation4]  }
  0x11   :  { %118 = dma.done.wait [#allocation4], 256  }
  0x12   :  { %119 = vsyncadd [#allocation4], 4294967040  ;;  %v28_v0 = vstv %s166_s0  ;;  %v26_v1 = vld [vmem:[#allocation3] sm:$0xff]  ;;  %v27_v2 = vld [vmem:[#allocation3 + $0x8] sm:$0xff]  ;;  %s123_s1 = smov [#allocation6]  }
  0x13   :  { %v29_v3 = vmul.f32 %v28_v0, %v26_v1  ;;  %v30_v4 = vmul.f32 %v28_v0, %v27_v2  ;;  %s53_s23 = sshll.u32 %s123_s1, 4  ;;  %s54_s23 = int_to_ptr.vmem [resolvable:$true] %s53_s23 }
  0x14   :  { %s96_s0 = scalar_lea.vmem %s54_s23, 256  ;;  %p101_p9 = scmp.lt.s32.totalorder %s54_s23, %s54_s23 }
  0x15   :  { %v62_v5 = vmul.f32 -1.442695, %v29_v3  ;;  %v63_v6 = vmul.f32 -1.442695, %v30_v4  ;;  %p97_p8 = scmp.ne.s32.totalorder %s54_s23, %s96_s0  ;;  %p102_p10 = scmp.lt.s32.totalorder %s96_s0, %s96_s0 }
  0x17   :  { %66 = vpow2.f32 %v62_v5  ;;  %p103_p11 = por %p102_p10, %p101_p9 }
  0x18   :  { %68 = vpow2.f32 %v63_v6 }
  0x19   :  { %p104_p12 = pnand %p103_p11, %p97_p8 }
  0x21   :  { %v67_v7 = vpop.eup %66 }
  0x22   :  { %v69_v8 = vpop.eup %68  ;;  %v37_v9 = vadd.f32 1.0, %v67_v7 }
  0x23   :  { %v38_v10 = vadd.f32 1.0, %v69_v8 }
  0x24   :  { %70 = vrcp.f32 %v37_v9 }
  0x25   :  { %72 = vrcp.f32 %v38_v10 }
  0x2e   :  { %v71_v11 = vpop.eup %70 }
  0x2f   :  { %v73_v12 = vpop.eup %72  ;;  %v43_v13 = vmul.f32 %v71_v11, %v26_v1 }
  0x30   :  { %v44_v14 = vmul.f32 %v73_v12, %v27_v2 }
  0x31   :  { %45 = vst [vmem:[#allocation6] sm:$0xff] %v43_v13 }
  0x32   :  { %46 = vst [vmem:[#allocation6 + $0x8] sm:$0xff] %v44_v14 }
  0x33   :  { %107 = shalt.err (!%p104_p12)
}
  0x34   :  { %s108_s26 = scalar_lea.hbm %s168_s2, 256 }
  0x35   :  { %p109_p13 = scmp.ne.s32.totalorder %s168_s2, %s108_s26  ;;  %p112_p0 = scmp.lt.u32.totalorder %s108_s26, %s168_s2 }
  0x37   :  { %p114_p1 = pnand %p112_p0, %p109_p13 }
  0x39   :  { %117 = shalt.err (!%p114_p1)
}
  0x3a   :  { %56 = dma.vmem_to_hbm [thread:$0]  %s54_s23, 256, %s168_s2, [#allocation5]  }
  0x3b   :  { %120 = dma.done.wait [#allocation5], 256  }
  0x3c   :  { %121 = vsyncadd [#allocation5], 4294967040 }
  0x3d   :  { %60 = vsyncpa [#allocation4], 1 }
  0x3e   :  { %61 = vsyncpa [#allocation5], 1 }

</bundles_post_ra>
